<compile_context>
chip_gen: v7x
topology: tpu7x:2x2x1
jax: 0.10.0
libtpu: 0.0.40
codegen_flags: <defaults>
</compile_context>

<pallas_src>
import jax
import jax.numpy as jnp
from jax.experimental import pallas as pl
from jax.experimental.pallas import tpu as pltpu


def _square_kernel(x_ref, o_ref):
    x = x_ref[...]
    o_ref[...] = x * x


# ~4 MiB per block buffer (the sweet spot for mem-bound elementwise ops);
# 4 buffers (double-buffered in + out) ~= 16 MiB VMEM.
_TARGET_BLOCK_BYTES = 4 * 1024 * 1024
_VMEM_LIMIT_BYTES = 32 * 1024 * 1024  # well under 64 MiB (v7x) / 128 MiB (v5e/v6e)

# Lane-dense column widths to try (largest first). All multiples of 128.
_COL_CANDIDATES = (16384, 8192, 4096, 2048, 1024, 512, 256, 128)


def _sublane_multiple(dtype):
    itemsize = jnp.dtype(dtype).itemsize
    return {4: 8, 2: 16, 1: 32}.get(itemsize, 8)


def _run_square_2d(x2d):
    rows, cols = x2d.shape
    dtype = x2d.dtype
    itemsize = jnp.dtype(dtype).itemsize
    sub = _sublane_multiple(dtype)

    # Row tile: largest multiple of the sublane packing whose block is ~4 MiB.
    tr = max(sub, (_TARGET_BLOCK_BYTES // (cols * itemsize)) // sub * sub)
    if tr >= rows:
        tr = rows  # single block along rows; full-extent dim is always legal
    grid = (pl.cdiv(rows, tr),)

    return pl.pallas_call(
        _square_kernel,
        out_shape=jax.ShapeDtypeStruct((rows, cols), dtype),
        grid_spec=pl.GridSpec(
            grid=grid,
            in_specs=[pl.BlockSpec((tr, cols), lambda i: (i, 0))],
            out_specs=pl.BlockSpec((tr, cols), lambda i: (i, 0)),
        ),
        compiler_params=pltpu.CompilerParams(
            dimension_semantics=("parallel",),
            vmem_limit_bytes=_VMEM_LIMIT_BYTES,
        ),
    )(x2d)


def square(x1, x2=None):
    """Elementwise x1 ** 2 (Pallas). x2 is accepted and ignored (matches Square.forward)."""
    orig_shape = x1.shape
    n = x1.size

    if n == 0:
        return x1 * x1  # degenerate empty input

    # Fast path: widest lane-dense column width that divides n exactly ->
    # zero-copy reshape in, zero-copy reshape out.
    cols = None
    for c in _COL_CANDIDATES:
        if n % c == 0:
            cols = c
            break

    if cols is not None:
        out2d = _run_square_2d(x1.reshape(n // cols, cols))
        return out2d.reshape(orig_shape)

    # Remainder path (n not a multiple of 128): one pad, one slice.
    cols = 1024 if n >= 1024 else 128
    padded = pl.cdiv(n, cols) * cols
    flat = jnp.pad(x1.reshape(-1), (0, padded - n))
    out2d = _run_square_2d(flat.reshape(padded // cols, cols))
    return out2d.reshape(-1)[:n].reshape(orig_shape)


if __name__ == "__main__":
    key = jax.random.PRNGKey(0)
    k1, k2 = jax.random.split(key)
    # Small NCHW-like input consistent with a generic elementwise op.
    x1 = jax.random.normal(k1, (2, 4, 16, 16), dtype=jnp.float32)
    x2 = jax.random.normal(k2, (2, 4, 16, 16), dtype=jnp.float32)  # unused by the module

    out = square(x1, x2)
    out = jax.block_until_ready(out)

    ref = x1 ** 2
    assert out.shape == x1.shape
    assert out.dtype == x1.dtype
    assert jnp.allclose(out, ref, atol=1e-6, rtol=1e-6)
    print("KERNEL_OK")
</pallas_src>

<mosaic_0001>
module attributes {stable_mosaic.version = 11 : i64} {
  func.func @_square_kernel(%arg0: i32, %arg1: memref<1x2048xf32, #tpu.memory_space<vmem>>, %arg2: memref<1x2048xf32, #tpu.memory_space<vmem>>) attributes {dimension_semantics = [#tpu.dimension_semantics<parallel>], iteration_bounds = array<i64: 1>, scalar_prefetch = 0 : i64, scratch_operands = 0 : i64, tpu.core_type = #tpu.core_type<tc>, window_params = [{transform_indices = @transform_0, window_bounds = array<i64: 1, 2048>}, {transform_indices = @transform_1, window_bounds = array<i64: 1, 2048>}]} {
    %c0 = arith.constant 0 : index
    %c0_0 = arith.constant 0 : index
    %0 = vector.load %arg1[%c0, %c0_0] : memref<1x2048xf32, #tpu.memory_space<vmem>>, vector<1x2048xf32>
    %1 = arith.mulf %0, %0 : vector<1x2048xf32>
    %c0_1 = arith.constant 0 : index
    %c0_2 = arith.constant 0 : index
    %2 = vector.load %arg2[%c0_1, %c0_2] : memref<1x2048xf32, #tpu.memory_space<vmem>>, vector<1x2048xf32>
    tpu.vector_store %arg2[%c0_1, %c0_2], %1 {strides = array<i32>} : memref<1x2048xf32, #tpu.memory_space<vmem>>, vector<1x2048xf32>,
    return
  }
  func.func @transform_0(%arg0: i32) -> (i32, i32) {
    %c0_i32 = arith.constant 0 : i32
    %c0_i32_0 = arith.constant 0 : i32
    return %arg0, %c0_i32 : i32, i32
  }
  func.func @transform_1(%arg0: i32) -> (i32, i32) {
    %c0_i32 = arith.constant 0 : i32
    %c0_i32_0 = arith.constant 0 : i32
    return %arg0, %c0_i32 : i32, i32
  }
}

</mosaic_0001>

<bundles_post_ra>
// kernel: tpu_custom_call.1
= control target key start
LH: loop header
LB: loop body
LE: loop exit
PB: predicated region body
PF: predicated region fallthrough
CT: control target
= control target key end

     0   :  { %6 = vsyncpa [#allocation3], 0  ;;  %s128_s0 = inlined_call_operand.hbm [shape: f32[1,2048], index: 0, kind: input, shape index: {}]   ;;  %s129_s1 = inlined_call_operand.hbm [shape: f32[1,2048], index: 1, kind: output, shape index: {}]  }
   0x1   :  { %7 = vsyncpa [#allocation4], 0  ;;  %s92_s6 = smov [#allocation2]   ;;  %s44_s10 = scalar_lea.hbm %s128_s0, 256 }
   0x2   :  { %s14_s7 = sshll.u32 %s92_s6, 4  ;;  %p45_p0 = scmp.ne.s32.totalorder %s128_s0, %s44_s10  ;;  %s15_s7 = int_to_ptr.vmem [resolvable:$true] %s14_s7 }
   0x3   :  { %p48_p1 = scmp.lt.u32.totalorder %s44_s10, %s128_s0 }
   0x5   :  { %p50_p2 = pnand %p48_p1, %p45_p0 }
   0x7   :  { %53 = shalt.err (!%p50_p2)
}
   0x8   :  { %s54_s15 = scalar_lea.vmem %s15_s7, 256  ;;  %p59_p4 = scmp.lt.s32.totalorder %s15_s7, %s15_s7 }
   0x9   :  { %p55_p3 = scmp.ne.s32.totalorder %s15_s7, %s54_s15  ;;  %p60_p5 = scmp.lt.s32.totalorder %s54_s15, %s54_s15 }
   0xb   :  { %p61_p6 = por %p60_p5, %p59_p4 }
   0xd   :  { %p62_p7 = pnand %p61_p6, %p55_p3 }
   0xf   :  { %65 = shalt.err (!%p62_p7)
}
  0x10   :  { %17 = dma.hbm_to_vmem [thread:$0]  %s128_s0, 256, %s15_s7, [#allocation3]  }
  0x11   :  { %88 = dma.done.wait [#allocation3], 256  }
  0x12   :  { %89 = vsyncadd [#allocation3], 4294967040  ;;  %s93_s18 = smov [#allocation5]   ;;  %v21_v0 = vld [vmem:[#allocation2] sm:$0xff]  ;;  %v22_v1 = vld [vmem:[#allocation2 + $0x8] sm:$0xff] }
  0x13   :  { %s33_s19 = sshll.u32 %s93_s18, 4  ;;  %v23_v2 = vmul.f32 %v21_v0, %v21_v0  ;;  %v24_v3 = vmul.f32 %v22_v1, %v22_v1  ;;  %s34_s19 = int_to_ptr.vmem [resolvable:$true] %s33_s19 }
  0x14   :  { %s66_s20 = scalar_lea.vmem %s34_s19, 256  ;;  %p71_p9 = scmp.lt.s32.totalorder %s34_s19, %s34_s19 }
  0x15   :  { %25 = vst [vmem:[#allocation5] sm:$0xff] %v23_v2  ;;  %26 = vst [vmem:[#allocation5 + $0x8] sm:$0xff] %v24_v3  ;;  %p67_p8 = scmp.ne.s32.totalorder %s34_s19, %s66_s20  ;;  %p72_p10 = scmp.lt.s32.totalorder %s66_s20, %s66_s20 }
  0x17   :  { %p73_p11 = por %p72_p10, %p71_p9 }
  0x19   :  { %p74_p12 = pnand %p73_p11, %p67_p8 }
  0x1b   :  { %77 = shalt.err (!%p74_p12)
}
  0x1c   :  { %s78_s22 = scalar_lea.hbm %s129_s1, 256 }
  0x1d   :  { %p79_p13 = scmp.ne.s32.totalorder %s129_s1, %s78_s22  ;;  %p82_p0 = scmp.lt.u32.totalorder %s78_s22, %s129_s1 }
  0x1f   :  { %p84_p1 = pnand %p82_p0, %p79_p13 }
  0x21   :  { %87 = shalt.err (!%p84_p1)
}
  0x22   :  { %36 = dma.vmem_to_hbm [thread:$0]  %s34_s19, 256, %s129_s1, [#allocation4]  }
  0x23   :  { %90 = dma.done.wait [#allocation4], 256  }
  0x24   :  { %91 = vsyncadd [#allocation4], 4294967040 }
  0x25   :  { %40 = vsyncpa [#allocation3], 1 }
  0x26   :  { %41 = vsyncpa [#allocation4], 1 }

</bundles_post_ra>
